<compile_context>
chip_gen: v7x
topology: tpu7x:2x2x1
jax: 0.10.0
libtpu: 0.0.40
codegen_flags: <defaults>
</compile_context>

<pallas_src>
import functools

import jax
import jax.numpy as jnp
from jax import lax
from jax.experimental import pallas as pl
from jax.experimental.pallas import tpu as pltpu


def _conv_block_kernel(xm_ref, xp_ref, xn_ref, w_ref, b_ref, o_ref, *,
                       Hb, W, Cin, Cout, strip_rows, neg_slope, compute_dtype):
    """One (batch, row-tile) step of 3x3 conv (stride 1, pad 1) + LeakyReLU.

    xm_ref: (1, Cin, Hb*W)          row tile, spatial flattened on the lane axis
    xp_ref: (1, Cin, strip_rows, W) strip containing the row just above the tile
    xn_ref: (1, Cin, strip_rows, W) strip containing the row just below the tile
    w_ref : (3, Cout, 3*Cin)        weights packed as [dy][cout][dx*Cin + cin]
    b_ref : (Cout, 1)               bias, f32
    o_ref : (1, Cout, Hb*W)         lane-dense output tile
    """
    i = pl.program_id(1)
    n_tiles = pl.num_programs(1)
    HbW = Hb * W
    L = (Hb + 2) * W

    mid = xm_ref[0].astype(compute_dtype)                          # (Cin, Hb*W)
    top = xp_ref[0][:, strip_rows - 1, :].astype(compute_dtype)    # (Cin, W) = row i*Hb-1
    bot = xn_ref[0][:, 0, :].astype(compute_dtype)                 # (Cin, W) = row i*Hb+Hb
    # Halo rows outside the image contribute zero (conv zero-padding, vertical part).
    top = top * (i > 0).astype(compute_dtype)
    bot = bot * (i < n_tiles - 1).astype(compute_dtype)

    # Halo'd row window, flattened on the lane axis: window row r <-> image row i*Hb-1+r.
    xh = jnp.concatenate([top, mid, bot], axis=1)                  # (Cin, (Hb+2)*W)

    # Horizontal (dx = -1 / +1) shifted copies, built once and reused for all 3 dy
    # taps.  Column validity masks are generated in-kernel (no HBM mask tensor).
    col = lax.broadcasted_iota(jnp.int32, (1, L), 1) % W
    lmask = (col >= 1).astype(compute_dtype)          # source column c-1 is in-image
    rmask = (col <= W - 2).astype(compute_dtype)      # source column c+1 is in-image
    zcol = jnp.zeros((Cin, 1), compute_dtype)
    x_l = jnp.concatenate([zcol, xh[:, :L - 1]], axis=1) * lmask   # x_l[:, q] = xh[:, q-1]
    x_r = jnp.concatenate([xh[:, 1:], zcol], axis=1) * rmask       # x_r[:, q] = xh[:, q+1]

    # Three accumulating MXU contractions of K = 3*Cin (one per dy): never
    # materialises the full 9*Cin im2col slab.  f32 accumulation.
    acc = None
    for dy in range(3):
        s = dy * W
        slab = jnp.concatenate(
            [x_l[:, s:s + HbW], xh[:, s:s + HbW], x_r[:, s:s + HbW]],
            axis=0)                                                # (3*Cin, Hb*W)
        part = lax.dot_general(
            w_ref[dy], slab,
            dimension_numbers=(((1,), (0,)), ((), ())),
            preferred_element_type=jnp.float32)                    # (Cout, Hb*W)
        acc = part if acc is None else acc + part

    acc = acc + b_ref[...]                                         # bias, f32
    out = jnp.maximum(acc, acc * neg_slope)                        # LeakyReLU(0.2)
    o_ref[0] = out.astype(o_ref.dtype)                             # lane-dense store


def _pick_row_tile(H, W, Cin, itemsize, target_bytes=2 << 20):
    """Pick an 8-aligned row tile: small per-step working set, prefer >=2 tiles."""
    cands = [d for d in range(8, H + 1, 8) if H % d == 0 and (d * W) % 128 == 0]
    if not cands:
        return H                                   # single tile per image (degenerate)
    fits = [d for d in cands if 10 * Cin * (d + 2) * W * itemsize <= target_bytes]
    if not fits:
        return min(cands)
    multi = [d for d in fits if H // d >= 2]       # keep the pipeline / both v7x cores fed
    return max(multi) if multi else max(fits)


def conv_block_forward(x, weight, bias, *, neg_slope=0.2, compute_dtype=None,
                       out_dtype=None, row_tile=None):
    """Equivalent of ConvBlock(ndims=2, stride=1).forward.

    x: (B, Cin, H, W); weight: (Cout, Cin, 3, 3); bias: (Cout,) -> (B, Cout, H, W).
    compute_dtype=jnp.bfloat16 uses bf16 MXU operands (f32 accumulation);
    out_dtype=jnp.bfloat16 halves output HBM traffic.
    """
    B, Cin, H, W = x.shape
    Cout = weight.shape[0]
    if compute_dtype is None:
        compute_dtype = x.dtype
    if out_dtype is None:
        out_dtype = x.dtype

    Hb = row_tile if row_tile is not None else _pick_row_tile(
        H, W, Cin, jnp.dtype(compute_dtype).itemsize)
    assert H % Hb == 0, (H, Hb)
    n_tiles = H // Hb

    # 8-row strips of the same activation deliver the single halo row above/below
    # each tile (index maps clamped at the image border; kernel zeroes those rows).
    strip_rows = 8 if (H % 8 == 0 and H >= 8) else H
    strip_blocks = H // strip_rows
    hs = Hb // strip_rows                                           # tile size in strips

    def prev_map(b, i):
        return (b, 0, jnp.maximum(i * hs - 1, 0), 0)

    def next_map(b, i):
        return (b, 0, jnp.minimum((i + 1) * hs, strip_blocks - 1), 0)

    x_flat = x.reshape(B, Cin, H * W)                 # NCHW is channel-major: metadata-only
    # (Cout, Cin, 3, 3) -> (3, Cout, 3*Cin): packed[dy, co, dx*Cin + ci] = w[co, ci, dy, dx]
    w_packed = jnp.transpose(weight, (2, 0, 3, 1)).reshape(3, Cout, 3 * Cin)
    w_packed = w_packed.astype(compute_dtype)
    b2 = bias.reshape(Cout, 1).astype(jnp.float32)

    kernel = functools.partial(
        _conv_block_kernel, Hb=Hb, W=W, Cin=Cin, Cout=Cout,
        strip_rows=strip_rows, neg_slope=neg_slope, compute_dtype=compute_dtype)

    out_flat = pl.pallas_call(
        kernel,
        out_shape=jax.ShapeDtypeStruct((B, Cout, H * W), out_dtype),
        grid_spec=pltpu.PrefetchScalarGridSpec(
            num_scalar_prefetch=0,
            grid=(B, n_tiles),
            in_specs=[
                pl.BlockSpec((1, Cin, Hb * W), lambda b, i: (b, 0, i)),
                pl.BlockSpec((1, Cin, strip_rows, W), prev_map),
                pl.BlockSpec((1, Cin, strip_rows, W), next_map),
                pl.BlockSpec((3, Cout, 3 * Cin), lambda b, i: (0, 0, 0)),
                pl.BlockSpec((Cout, 1), lambda b, i: (0, 0)),
            ],
            out_specs=pl.BlockSpec((1, Cout, Hb * W), lambda b, i: (b, 0, i)),
        ),
        compiler_params=pltpu.CompilerParams(
            dimension_semantics=("parallel", "parallel"),
        ),
    )(x_flat, x, x, w_packed, b2)

    return out_flat.reshape(B, Cout, H, W)            # metadata-only reshape back to NCHW


def _reference(x, weight, bias, neg_slope=0.2):
    out = lax.conv_general_dilated(
        x, weight, window_strides=(1, 1), padding=((1, 1), (1, 1)),
        dimension_numbers=("NCHW", "OIHW", "NCHW"))
    out = out + bias.reshape(1, -1, 1, 1)
    return jnp.where(out > 0, out, neg_slope * out)


if __name__ == "__main__":
    key = jax.random.PRNGKey(0)
    k1, k2, k3 = jax.random.split(key, 3)

    B, Cin, H, W = 2, 4, 16, 16
    Cout = 8   # ConvBlock(ndims=2, in_channels=4, out_channels=8, stride=1)

    x = jax.random.normal(k1, (B, Cin, H, W), dtype=jnp.float32)
    weight = jax.random.normal(k2, (Cout, Cin, 3, 3), dtype=jnp.float32) * 0.1
    bias = jax.random.normal(k3, (Cout,), dtype=jnp.float32) * 0.05

    out = jax.block_until_ready(conv_block_forward(x, weight, bias))

    ref = _reference(x, weight, bias)
    assert out.shape == (B, Cout, H, W)
    err = float(jnp.max(jnp.abs(out - ref)))
    assert jnp.allclose(out, ref, atol=1e-5, rtol=1e-5), err

    print("KERNEL_OK")
</pallas_src>

<mosaic_0001>
module attributes {stable_mosaic.version = 11 : i64} {
  func.func @_conv_block_kernel(%arg0: i32, %arg1: i32, %arg2: memref<1x4x128xf32, #tpu.memory_space<vmem>>, %arg3: memref<1x4x8x16xf32, #tpu.memory_space<vmem>>, %arg4: memref<1x4x8x16xf32, #tpu.memory_space<vmem>>, %arg5: memref<3x8x12xf32, #tpu.memory_space<vmem>>, %arg6: memref<8x1xf32, #tpu.memory_space<vmem>>, %arg7: memref<1x8x128xf32, #tpu.memory_space<vmem>>) attributes {dimension_semantics = [#tpu.dimension_semantics<parallel>, #tpu.dimension_semantics<parallel>], iteration_bounds = array<i64: 2, 2>, scalar_prefetch = 0 : i64, scratch_operands = 0 : i64, tpu.core_type = #tpu.core_type<tc>, window_params = [{transform_indices = @transform_0, window_bounds = array<i64: 1, 4, 128>}, {transform_indices = @transform_1, window_bounds = array<i64: 1, 4, 8, 16>}, {transform_indices = @transform_2, window_bounds = array<i64: 1, 4, 8, 16>}, {pipeline_mode = #tpu.pipeline_mode<synchronous>, transform_indices = @transform_3, window_bounds = array<i64: 3, 8, 12>}, {pipeline_mode = #tpu.pipeline_mode<synchronous>, transform_indices = @transform_4, window_bounds = array<i64: 8, 1>}, {transform_indices = @transform_5, window_bounds = array<i64: 1, 8, 128>}]} {
    %c0 = arith.constant 0 : index
    %c0_0 = arith.constant 0 : index
    %c0_1 = arith.constant 0 : index
    %0 = vector.load %arg2[%c0, %c0_0, %c0_1] : memref<1x4x128xf32, #tpu.memory_space<vmem>>, vector<1x4x128xf32>
    %1 = vector.shape_cast %0 : vector<1x4x128xf32> to vector<4x128xf32>
    %c0_2 = arith.constant 0 : index
    %c0_3 = arith.constant 0 : index
    %c0_4 = arith.constant 0 : index
    %c0_5 = arith.constant 0 : index
    %2 = vector.load %arg3[%c0_2, %c0_3, %c0_4, %c0_5] : memref<1x4x8x16xf32, #tpu.memory_space<vmem>>, vector<1x4x8x16xf32>
    %3 = vector.shape_cast %2 : vector<1x4x8x16xf32> to vector<4x8x16xf32>
    %4 = vector.extract_strided_slice %3 {offsets = [0, 7, 0], sizes = [4, 1, 16], strides = [1, 1, 1]} : vector<4x8x16xf32> to vector<4x1x16xf32>
    %5 = vector.shape_cast %4 : vector<4x1x16xf32> to vector<4x16xf32>
    %c0_6 = arith.constant 0 : index
    %c0_7 = arith.constant 0 : index
    %c0_8 = arith.constant 0 : index
    %c0_9 = arith.constant 0 : index
    %6 = vector.load %arg4[%c0_6, %c0_7, %c0_8, %c0_9] : memref<1x4x8x16xf32, #tpu.memory_space<vmem>>, vector<1x4x8x16xf32>
    %7 = vector.shape_cast %6 : vector<1x4x8x16xf32> to vector<4x8x16xf32>
    %8 = vector.extract_strided_slice %7 {offsets = [0, 0, 0], sizes = [4, 1, 16], strides = [1, 1, 1]} : vector<4x8x16xf32> to vector<4x1x16xf32>
    %9 = vector.shape_cast %8 : vector<4x1x16xf32> to vector<4x16xf32>
    %c0_i32 = arith.constant 0 : i32
    %10 = arith.cmpi sgt, %arg1, %c0_i32 : i32
    %11 = arith.extui %10 : i1 to i32
    %12 = arith.sitofp %11 : i32 to f32
    %13 = vector.broadcast %12 : f32 to vector<4x16xf32>
    %14 = arith.mulf %5, %13 : vector<4x16xf32>
    %c1_i32 = arith.constant 1 : i32
    %15 = arith.cmpi slt, %arg1, %c1_i32 : i32
    %16 = arith.extui %15 : i1 to i32
    %17 = arith.sitofp %16 : i32 to f32
    %18 = vector.broadcast %17 : f32 to vector<4x16xf32>
    %19 = arith.mulf %9, %18 : vector<4x16xf32>
    %20 = tpu.concatenate %14, %1, %19 in 1 : vector<4x16xf32>, vector<4x128xf32>, vector<4x16xf32> -> vector<4x160xf32>
    %21 = tpu.iota {dimensions = array<i32: 1>} : vector<1x160xi32>
    %c16_i32 = arith.constant 16 : i32
    %c0_i32_10 = arith.constant 0 : i32
    %22 = arith.cmpi eq, %c16_i32, %c0_i32_10 : i32
    %c1_i32_11 = arith.constant 1 : i32
    %23 = arith.select %22, %c1_i32_11, %c16_i32 : i32
    %24 = vector.broadcast %23 : i32 to vector<1x160xi32>
    %25 = arith.remsi %21, %24 : vector<1x160xi32>
    %c0_i32_12 = arith.constant 0 : i32
    %26 = vector.broadcast %c0_i32_12 : i32 to vector<1x160xi32>
    %27 = arith.cmpi ne, %25, %26 : vector<1x160xi32>
    %c0_i32_13 = arith.constant 0 : i32
    %28 = vector.broadcast %c0_i32_13 : i32 to vector<1x160xi32>
    %29 = arith.cmpi slt, %25, %28 : vector<1x160xi32>
    %c0_i32_14 = arith.constant 0 : i32
    %30 = arith.cmpi slt, %23, %c0_i32_14 : i32
    %31 = vector.broadcast %30 : i1 to vector<1x160xi1>
    %32 = vector.broadcast %31 : vector<1x160xi1> to vector<1x160xi1>
    %33 = arith.xori %29, %32 : vector<1x160xi1>
    %34 = arith.andi %33, %27 : vector<1x160xi1>
    %35 = vector.broadcast %23 : i32 to vector<1x160xi32>
    %36 = arith.addi %25, %35 : vector<1x160xi32>
    %37 = arith.select %34, %36, %25 : vector<1x160xi1>, vector<1x160xi32>
    %c1_i32_15 = arith.constant 1 : i32
    %38 = vector.broadcast %c1_i32_15 : i32 to vector<1x160xi32>
    %39 = arith.cmpi sge, %37, %38 : vector<1x160xi32>
    %40 = arith.extui %39 : vector<1x160xi1> to vector<1x160xi32>
    %41 = arith.sitofp %40 : vector<1x160xi32> to vector<1x160xf32>
    %c14_i32 = arith.constant 14 : i32
    %42 = vector.broadcast %c14_i32 : i32 to vector<1x160xi32>
    %43 = arith.cmpi sle, %37, %42 : vector<1x160xi32>
    %44 = arith.extui %43 : vector<1x160xi1> to vector<1x160xi32>
    %45 = arith.sitofp %44 : vector<1x160xi32> to vector<1x160xf32>
    %cst = arith.constant 0.000000e+00 : f32
    %46 = vector.broadcast %cst : f32 to vector<4x1xf32>
    %47 = vector.extract_strided_slice %20 {offsets = [0, 0], sizes = [4, 159], strides = [1, 1]} : vector<4x160xf32> to vector<4x159xf32>
    %48 = tpu.concatenate %46, %47 in 1 : vector<4x1xf32>, vector<4x159xf32> -> vector<4x160xf32>
    %49 = vector.broadcast %41 : vector<1x160xf32> to vector<4x160xf32>
    %50 = arith.mulf %48, %49 : vector<4x160xf32>
    %51 = vector.extract_strided_slice %20 {offsets = [0, 1], sizes = [4, 159], strides = [1, 1]} : vector<4x160xf32> to vector<4x159xf32>
    %52 = tpu.concatenate %51, %46 in 1 : vector<4x159xf32>, vector<4x1xf32> -> vector<4x160xf32>
    %53 = vector.broadcast %45 : vector<1x160xf32> to vector<4x160xf32>
    %54 = arith.mulf %52, %53 : vector<4x160xf32>
    %55 = vector.extract_strided_slice %50 {offsets = [0, 0], sizes = [4, 128], strides = [1, 1]} : vector<4x160xf32> to vector<4x128xf32>
    %56 = vector.extract_strided_slice %20 {offsets = [0, 0], sizes = [4, 128], strides = [1, 1]} : vector<4x160xf32> to vector<4x128xf32>
    %57 = vector.extract_strided_slice %54 {offsets = [0, 0], sizes = [4, 128], strides = [1, 1]} : vector<4x160xf32> to vector<4x128xf32>
    %58 = tpu.concatenate %55, %56, %57 in 0 : vector<4x128xf32>, vector<4x128xf32>, vector<4x128xf32> -> vector<12x128xf32>
    %c0_16 = arith.constant 0 : index
    %c0_17 = arith.constant 0 : index
    %c0_18 = arith.constant 0 : index
    %59 = vector.load %arg5[%c0_16, %c0_17, %c0_18] : memref<3x8x12xf32, #tpu.memory_space<vmem>>, vector<1x8x12xf32>
    %60 = vector.shape_cast %59 : vector<1x8x12xf32> to vector<8x12xf32>
    %cst_19 = arith.constant dense<0.000000e+00> : vector<8x128xf32>
    %61 = tpu.matmul %60, %58, %cst_19 {dimension_numbers = #tpu.dot_dimension_numbers<[1], [0], [0], [1], [0, 0, 1, 1], [], []>} : vector<8x12xf32>, vector<12x128xf32>, vector<8x128xf32> -> vector<8x128xf32>
    %62 = vector.extract_strided_slice %50 {offsets = [0, 16], sizes = [4, 128], strides = [1, 1]} : vector<4x160xf32> to vector<4x128xf32>
    %63 = vector.extract_strided_slice %20 {offsets = [0, 16], sizes = [4, 128], strides = [1, 1]} : vector<4x160xf32> to vector<4x128xf32>
    %64 = vector.extract_strided_slice %54 {offsets = [0, 16], sizes = [4, 128], strides = [1, 1]} : vector<4x160xf32> to vector<4x128xf32>
    %65 = tpu.concatenate %62, %63, %64 in 0 : vector<4x128xf32>, vector<4x128xf32>, vector<4x128xf32> -> vector<12x128xf32>
    %c1 = arith.constant 1 : index
    %c0_20 = arith.constant 0 : index
    %c0_21 = arith.constant 0 : index
    %66 = vector.load %arg5[%c1, %c0_20, %c0_21] : memref<3x8x12xf32, #tpu.memory_space<vmem>>, vector<1x8x12xf32>
    %67 = vector.shape_cast %66 : vector<1x8x12xf32> to vector<8x12xf32>
    %cst_22 = arith.constant dense<0.000000e+00> : vector<8x128xf32>
    %68 = tpu.matmul %67, %65, %cst_22 {dimension_numbers = #tpu.dot_dimension_numbers<[1], [0], [0], [1], [0, 0, 1, 1], [], []>} : vector<8x12xf32>, vector<12x128xf32>, vector<8x128xf32> -> vector<8x128xf32>
    %69 = arith.addf %61, %68 : vector<8x128xf32>
    %70 = vector.extract_strided_slice %50 {offsets = [0, 32], sizes = [4, 128], strides = [1, 1]} : vector<4x160xf32> to vector<4x128xf32>
    %71 = vector.extract_strided_slice %20 {offsets = [0, 32], sizes = [4, 128], strides = [1, 1]} : vector<4x160xf32> to vector<4x128xf32>
    %72 = vector.extract_strided_slice %54 {offsets = [0, 32], sizes = [4, 128], strides = [1, 1]} : vector<4x160xf32> to vector<4x128xf32>
    %73 = tpu.concatenate %70, %71, %72 in 0 : vector<4x128xf32>, vector<4x128xf32>, vector<4x128xf32> -> vector<12x128xf32>
    %c2 = arith.constant 2 : index
    %c0_23 = arith.constant 0 : index
    %c0_24 = arith.constant 0 : index
    %74 = vector.load %arg5[%c2, %c0_23, %c0_24] : memref<3x8x12xf32, #tpu.memory_space<vmem>>, vector<1x8x12xf32>
    %75 = vector.shape_cast %74 : vector<1x8x12xf32> to vector<8x12xf32>
    %cst_25 = arith.constant dense<0.000000e+00> : vector<8x128xf32>
    %76 = tpu.matmul %75, %73, %cst_25 {dimension_numbers = #tpu.dot_dimension_numbers<[1], [0], [0], [1], [0, 0, 1, 1], [], []>} : vector<8x12xf32>, vector<12x128xf32>, vector<8x128xf32> -> vector<8x128xf32>
    %77 = arith.addf %69, %76 : vector<8x128xf32>
    %c0_26 = arith.constant 0 : index
    %c0_27 = arith.constant 0 : index
    %78 = vector.load %arg6[%c0_26, %c0_27] : memref<8x1xf32, #tpu.memory_space<vmem>>, vector<8x1xf32>
    %79 = vector.broadcast %78 : vector<8x1xf32> to vector<8x128xf32>
    %80 = arith.addf %77, %79 : vector<8x128xf32>
    %cst_28 = arith.constant 2.000000e-01 : f32
    %81 = vector.broadcast %cst_28 : f32 to vector<8x128xf32>
    %82 = arith.mulf %80, %81 : vector<8x128xf32>
    %83 = arith.maximumf %80, %82 : vector<8x128xf32>
    %c0_29 = arith.constant 0 : index
    %c0_30 = arith.constant 0 : index
    %c0_31 = arith.constant 0 : index
    %84 = vector.load %arg7[%c0_29, %c0_30, %c0_31] : memref<1x8x128xf32, #tpu.memory_space<vmem>>, vector<1x8x128xf32>
    %85 = vector.shape_cast %84 : vector<1x8x128xf32> to vector<8x128xf32>
    %86 = vector.shape_cast %83 : vector<8x128xf32> to vector<1x8x128xf32>
    tpu.vector_store %arg7[%c0_29, %c0_30, %c0_31], %86 {strides = array<i32>} : memref<1x8x128xf32, #tpu.memory_space<vmem>>, vector<1x8x128xf32>,
    return
  }
  func.func @transform_0(%arg0: i32, %arg1: i32) -> (i32, i32, i32) {
    %c0_i32 = arith.constant 0 : i32
    %c0_i32_0 = arith.constant 0 : i32
    return %arg0, %c0_i32, %arg1 : i32, i32, i32
  }
  func.func @transform_1(%arg0: i32, %arg1: i32) -> (i32, i32, i32, i32) {
    %c1_i32 = arith.constant 1 : i32
    %0 = arith.muli %arg1, %c1_i32 : i32
    %c1_i32_0 = arith.constant 1 : i32
    %1 = arith.subi %0, %c1_i32_0 : i32
    %c0_i32 = arith.constant 0 : i32
    %2 = arith.maxsi %1, %c0_i32 : i32
    %c0_i32_1 = arith.constant 0 : i32
    %c0_i32_2 = arith.constant 0 : i32
    %c0_i32_3 = arith.constant 0 : i32
    return %arg0, %c0_i32_1, %2, %c0_i32_2 : i32, i32, i32, i32
  }
  func.func @transform_2(%arg0: i32, %arg1: i32) -> (i32, i32, i32, i32) {
    %c1_i32 = arith.constant 1 : i32
    %0 = arith.addi %arg1, %c1_i32 : i32
    %c1_i32_0 = arith.constant 1 : i32
    %1 = arith.muli %0, %c1_i32_0 : i32
    %c1_i32_1 = arith.constant 1 : i32
    %2 = arith.minsi %1, %c1_i32_1 : i32
    %c0_i32 = arith.constant 0 : i32
    %c0_i32_2 = arith.constant 0 : i32
    %c0_i32_3 = arith.constant 0 : i32
    return %arg0, %c0_i32, %2, %c0_i32_2 : i32, i32, i32, i32
  }
  func.func @transform_3(%arg0: i32, %arg1: i32) -> (i32, i32, i32) {
    %c0_i32 = arith.constant 0 : i32
    %c0_i32_0 = arith.constant 0 : i32
    %c0_i32_1 = arith.constant 0 : i32
    %c0_i32_2 = arith.constant 0 : i32
    return %c0_i32, %c0_i32_0, %c0_i32_1 : i32, i32, i32
  }
  func.func @transform_4(%arg0: i32, %arg1: i32) -> (i32, i32) {
    %c0_i32 = arith.constant 0 : i32
    %c0_i32_0 = arith.constant 0 : i32
    %c0_i32_1 = arith.constant 0 : i32
    return %c0_i32, %c0_i32_0 : i32, i32
  }
  func.func @transform_5(%arg0: i32, %arg1: i32) -> (i32, i32, i32) {
    %c0_i32 = arith.constant 0 : i32
    %c0_i32_0 = arith.constant 0 : i32
    return %arg0, %c0_i32, %arg1 : i32, i32, i32
  }
}

</mosaic_0001>

<bundles_post_ra>
// kernel: tpu_custom_call.1
= control target key start
LH: loop header
LB: loop body
LE: loop exit
PB: predicated region body
PF: predicated region fallthrough
CT: control target
= control target key end

     0   :  { %s2072_s0 = inlined_call_operand.hbm [shape: f32[2,4,256], index: 0, kind: input, shape index: {}]   ;;  %s2073_s1 = inlined_call_operand.hbm [shape: f32[2,4,16,16], index: 1, kind: input, shape index: {}]   ;;  %s2074_s2 = inlined_call_operand.hbm [shape: f32[2,4,16,16], index: 2, kind: input, shape index: {}]   ;;  %s2075_s3 = inlined_call_operand.hbm [shape: f32[3,8,12], index: 3, kind: input, shape index: {}]   ;;  %s2076_s4 = inlined_call_operand.vmem [shape: f32[8,1], index: 4, kind: input, shape index: {}]   ;;  %s2077_s5 = inlined_call_operand.hbm [shape: f32[2,8,256], index: 5, kind: output, shape index: {}]  }
   0x1   :  { %2103 = sst [smem:[#allocation27_spill]] %s2073_s1 }
   0x2   :  { %2104 = sst [smem:[#allocation28_spill]] %s2075_s3 }
   0x3   :  { %2105 = sst [smem:[#allocation29_spill]] %s2076_s4 }
   0x4   :  { %2106 = sst [smem:[#allocation30_spill]] %s2077_s5 }
   0x5   :  { %10 = vsyncpa [#allocation3], 0 }
   0x6   :  { %12 = vsyncpa [#allocation3 + $0x1], 0 }
   0x7   :  { %13 = vsyncpa [#allocation6], 0 }
   0x8   :  { %15 = vsyncpa [#allocation6 + $0x1], 0 }
   0x9   :  { %16 = vsyncpa [#allocation9], 0 }
   0xa   :  { %17 = vsyncpa [#allocation4], 0 }
   0xb   :  { %19 = vsyncpa [#allocation4 + $0x1], 0  ;;  %s1566_s18 = smov 0   ;;  %s1568_s19 = smov 0  }
   0xc   :  { %s1570_s20 = smov 0   ;;  %s1572_s21 = smov 0  }
   0xd   :  { %s1574_s22 = smov 0   ;;  %s1576_s23 = smov 0  }
   0xe   :  { %s1578_s24 = smov 0   ;;  %s1580_s25 = smov 0  }
   0xf   :  { %s1582_s26 = smov 0   ;;  %s1584_s27 = smov 0  }
  0x10   :  { %s1586_s28 = smov 0   ;;  %s1588_s29 = smov 0  }
  0x11   :  { %s1590_s30 = smov 0   ;;  %s1592_s6 = smov 0  }
  0x12 LB: > { %2107 = sst [smem:[#allocation16_spill]] %s1484_s23  ;;  %s34_s7 = sadd.s32 1, %s1508_s29  ;;  %s1516_s6 = sphi %s1592_s6, %s25_s6   ;;  %s1512_s30 = sphi %s1590_s30, %s2175_s30   ;;  %s1508_s29 = sphi %s1588_s29, %s2174_s29   ;;  %s1504_s28 = sphi %s1586_s28, %s2173_s28   ;;  %s1500_s27 = sphi %s1584_s27, %s2172_s27   ;;  %s1496_s26 = sphi %s1582_s26, %s2171_s26   ;;  %s1492_s25 = sphi %s1580_s25, %s2170_s25   ;;  %s1488_s24 = sphi %s1578_s24, %s2169_s24   ;;  %s1484_s23 = sphi %s1576_s23, %s2159_s23   ;;  %s1480_s22 = sphi %s1574_s22, %s2168_s22   ;;  %s1476_s21 = sphi %s1572_s21, %s2167_s21   ;;  %s1472_s20 = sphi %s1570_s20, %s2166_s20   ;;  %s1468_s19 = sphi %s1568_s19, %s2165_s19   ;;  %s1464_s18 = sphi %s1566_s18, %s2164_s18  }
  0x13   : > { %2108 = sst [smem:[#allocation17_spill]] %s1488_s24  ;;  %p35_p0 = scmp.ge.s32.totalorder %s34_s7, 2 }
  0x14   : > { %2109 = sst [smem:[#allocation18_spill]] %s1496_s26  ;;  %s37_s8 = sadd.s32 1, %s1512_s30 }
  0x15   : > { %2110 = sst [smem:[#allocation19_spill]] %s1500_s27  ;;  %p2083_p1 = scmp.eq.s32.totalorder %s1516_s6, 0 }
  0x16   : > { %2111 = sst [smem:[#allocation20_spill]] %s1504_s28  ;;  %s2177_s7 = smov (%p35_p0, %s34_s7), 0 }
  0x17   : > { %2112 = sst [smem:[#allocation21_spill]] %s2177_s7  ;;  %s2179_s8 = smov (!%p35_p0, %s37_s8), %s1512_s30 }
  0x18   : > { %p39_p2 = scmp.ge.s32.totalorder %s2179_s8, 2  ;;  %p87_p3 = scmp.ne.s32.totalorder %s1484_s23, %s1480_s22 }
  0x19   : > { %s80_s10 = sadd.s32 1, %s1484_s23  ;;  %p93_p4 = scmp.ne.s32.totalorder %s1480_s22, %s1476_s21 }
  0x1a   : > { %s2181_s8 = smov (%p39_p2, %s2179_s8), 0  ;;  %p89_p6 = por %p87_p3, %p2083_p1 }
  0x1b   : > { %2113 = sst [smem:[#allocation22_spill]] %s2181_s8  ;;  %s1646_s9 = ssub.s32 %s1512_s30, %s2181_s8 }
  0x1c   : > { %p2081_p5 = scmp.eq.s32.totalorder %s1646_s9, 0  ;;  %s257_s12 = sand.u32 1, %s1516_s6  }
  0x1d   : > { %s259_s13 = sand.u32 1, %s1484_s23   ;;  %p2082_p7 = scmp.lt.s32.totalorder %s1516_s6, 4 }
  0x1e   : > { %s1659_s11 = scalar_select %p2081_p5, %s1484_s23, %s80_s10  }
  0x1f   : > { %s984_s14 = sshll.u32 %s259_s13, 5  ;;  %s2080_s17 = sshll.u32 %s1512_s30, 10 }
  0x20   : > { %2114 = sst [smem:[#allocation23_spill]] %s1659_s11  ;;  %s261_s15 = scalar_lea.vmem [#allocation5], %s984_s14 }
  0x21   : > { %s272_s16 = sshll.u32 %s261_s15, 4  ;;  %p1669_p8 = pnand %p2082_p7, %p89_p6  ;;  %s1664_s16 = int_to_ptr.vmem [resolvable:$true] %s272_s16 }
  0x22   : > { %s2116_s1 = sld [smem:[#allocation27_spill]]  ;;  %s1680_s13 = scalar_lea.sflag [#allocation6], %s257_s12 }
  0x23   : > { %p1238_p10 = pneg %p1669_p8 }
  0x28   : > { %s1678_s10 = scalar_lea.hbm %s2116_s1, %s2080_s17  ;;  %s1241_s28 = scalar_lea.hbm %s2116_s1, 2048 }
  0x29   : > { %s1236_s14 = scalar_lea.hbm %s1678_s10, 512  ;;  %p1242_p13 = scmp.lt.u32.totalorder %s1678_s10, %s2116_s1 }
  0x2a   : > { %p1237_p9 = scmp.ne.s32.totalorder %s1678_s10, %s1236_s14  ;;  %p1243_p0 = scmp.lt.u32.totalorder %s1241_s28, %s1236_s14 }
  0x2b   : > { %p1245_p3 = scmp.lt.u32.totalorder %s1236_s14, %s1678_s10 }
  0x2c   : > { %p1239_p11 = pnand %p1238_p10, %p1237_p9  ;;  %p1244_p2 = por %p1243_p0, %p1242_p13 }
  0x2e   : > { %p1240_p12 = pneg %p1239_p11  ;;  %p1246_p6 = por %p1245_p3, %p1244_p2 }
  0x30   : > { %p1247_p5 = pnand %p1246_p6, %p1240_p12 }
  0x32   : > { %1250 = shalt.err (!%p1247_p5)
}
  0x33   : > { %s1251_s12 = scalar_lea.vmem %s1664_s16, 512  ;;  %s1518_s15 = smov [#allocation5]  }
  0x34   : > { %p1252_p9 = scmp.ne.s32.totalorder %s1664_s16, %s1251_s12  ;;  %s1256_s5 = sshll.u32 %s1518_s15, 4  ;;  %s1257_s5 = int_to_ptr.vmem [resolvable:$false] %s1256_s5 }
  0x35   : > { %s1258_s11 = scalar_lea.vmem %s1257_s5, 1024  ;;  %p1259_p1 = scmp.lt.s32.totalorder %s1664_s16, %s1257_s5 }
  0x36   : > { %p1254_p11 = pnand %p1252_p9, %p1238_p10  ;;  %p1260_p13 = scmp.lt.s32.totalorder %s1258_s11, %s1251_s12 }
  0x38   : > { %p1255_p7 = pneg %p1254_p11  ;;  %p1261_p0 = por %p1260_p13, %p1259_p1 }
  0x3a   : > { %p1262_p2 = pnand %p1261_p0, %p1255_p7 }
  0x3c   : > { %1265 = shalt.err (!%p1262_p2)
}
  0x3d   : > { %s2084_s17 = smov 256   ;;  %s2085_s14 = smov 128  }
  0x3e   : > { %s2087_s28 = smov 8   ;;  %s2117_s12 = sshll.u32 %s1512_s30, 10 }
  0x3f   : > { %1076 = dma.hbm_to_vmem [thread:$0]  (!%p1669_p8), %s1678_s10, 512, %s1664_s16, %s1680_s13, %s2084_s17, %s2085_s14, %s2087_s28  }
  0x40   : > { %s1713_s15 = sadd.s32 128, %s2117_s12  ;;  %s1716_s5 = sadd.s32 4294967295, %s1516_s6  }
  0x41   : > { %p127_p1 = scmp.ne.s32.totalorder %s1468_s19, %s1464_s18  ;;  %p2091_p5 = scmp.eq.s32.totalorder %s1716_s5, 0 }
  0x42   : > { %p978_p7 = scmp.ge.s32.totalorder %s1516_s6, 1  ;;  %p208_p10 = scmp.lt.s32.totalorder %s1516_s6, 5 }
  0x43   : > { %p1728_p12 = por %p93_p4, %p2091_p5  ;;  %p1734_p8 = por %p127_p1, %p2091_p5 }
  0x44   : > { %p1738_p3 = pnand %p978_p7, %p208_p10  ;;  %s1522_s18 = smov [#allocation8]  }
  0x45   : > { %s2118_s8 = scalar_select %p1728_p12, 1, 0 }
  0x46   : > { %s2119_s16 = scalar_select %p1734_p8, 1, 0 }
  0x47   : > { %s2121_s10 = scalar_select %p1738_p3, 1, 0 }
  0x48   : > { %2120 = sst [smem:[#allocation24_spill]] %s2119_s16  ;;  %s220_s11 = sshll.u32 %s1522_s18, 4  ;;  %s221_s11 = int_to_ptr.vmem [resolvable:$true] %s220_s11 }
  0x49   : > { %p1066_p6 = pneg %p1738_p3  ;;  %s975_s12 = sadd.s32 4294967294, %s1516_s6  }
  0x4a   : > { %s2123_s3 = sld [smem:[#allocation28_spill]] }
  0x4b   : > { %p1746_p4 = pnand %p1066_p6, %p2091_p5 }
  0x4d   : > { %p1268_p11 = pneg %p1746_p4 }
  0x50   : > { %s1266_s28 = scalar_lea.hbm %s2123_s3, 384 }
  0x51   : > { %p1267_p9 = scmp.ne.s32.totalorder %s2123_s3, %s1266_s28  ;;  %p1273_p2 = scmp.lt.u32.totalorder %s1266_s28, %s2123_s3 }
  0x53   : > { %p1269_p13 = pnand %p1268_p11, %p1267_p9 }
  0x55   : > { %p1270_p0 = pneg %p1269_p13 }
  0x57   : > { %p1275_p1 = pnand %p1273_p2, %p1270_p0 }
  0x59   : > { %1278 = shalt.err (!%p1275_p1)
}
  0x5a   : > { %s1279_s27 = scalar_lea.vmem %s221_s11, 384  ;;  %p1287_p5 = scmp.lt.s32.totalorder %s221_s11, %s221_s11 }
  0x5b   : > { %p1280_p7 = scmp.ne.s32.totalorder %s221_s11, %s1279_s27  ;;  %p1288_p8 = scmp.lt.s32.totalorder %s1279_s27, %s1279_s27 }
  0x5d   : > { %p1282_p10 = pnand %p1280_p7, %p1268_p11  ;;  %p1289_p12 = por %p1288_p8, %p1287_p5 }
  0x5f   : > { %p1283_p6 = pneg %p1282_p10 }
  0x61   : > { %p1290_p3 = pnand %p1289_p12, %p1283_p6 }
  0x63   : > { %1293 = shalt.err (!%p1290_p3)
}
  0x64   : > { %s2124_s1 = smov 8   ;;  %s2125_s23 = smov 128  }
  0x65   : > { %1069 = dma.hbm_to_vmem [thread:$0]  (!%p1746_p4), %s2123_s3, 384, %s221_s11, [#allocation9], %s2125_s23, %s2125_s23, %s2124_s1  }
  0x66   : > { %s42_s4 = ssub.s32 %s1508_s29, %s2177_s7  ;;  %s46_s27 = sadd.s32 1, %s1496_s26 }
  0x67   : > { %s43_s28 = sor.u32 %s42_s4, %s1646_s9  ;;  %p53_p5 = scmp.ne.s32.totalorder %s1496_s26, %s1492_s25 }
  0x68   : > { %p44_p12 = scmp.eq.s32.totalorder %s43_s28, 0  ;;  %p59_p8 = scmp.ne.s32.totalorder %s1492_s25, %s1488_s24 }
  0x69   : > { %p2126_p3 = scmp.eq.s32.totalorder %s1516_s6, 0  ;;  %p195_p11 = scmp.eq.s32.totalorder %s1716_s5, 3 }
  0x6a   : > { %s1786_s18 = scalar_select %p44_p12, %s1496_s26, %s46_s27  }
  0x6b   : > { %p1780_p9 = por %p2126_p3, %p53_p5  ;;  %p2129_p13 = scmp.eq.s32.totalorder %s1716_s5, 0 }
  0x6c   : > { %2128 = sst [smem:[#allocation25_spill]] %s1786_s18  ;;  %p1794_p0 = por %p195_p11, %p53_p5 }
  0x6d   : > { %p1790_p4 = por %p2129_p13, %p59_p8  ;;  %p201_p2 = scmp.eq.s32.totalorder %s975_s12, 3 }
  0x6e   : > { %s2131_s17 = scalar_select %p1794_p0, 1, 0 }
  0x6f   : > { %s237_s14 = sand.u32 1, %s1496_s26   ;;  %p1799_p1 = por %p201_p2, %p59_p8 }
  0x70   : > { %2132 = sst [smem:[#allocation26_spill]] %s2131_s17  ;;  %s981_s4 = sshll.u32 %s237_s14, 2 }
  0x71   : > { %s2133_s28 = scalar_select %p1799_p1, 1, 0 }
  0x72   : > { %s982_s3 = sshll.u32 %s1512_s30, 1  ;;  %s241_s7 = scalar_lea.vmem [#allocation2], %s981_s4 }
  0x73   : > { %s250_s27 = sshll.u32 %s241_s7, 4  ;;  %s246_s18 = sadd.s32 %s1508_s29, %s982_s3  ;;  %s1805_s27 = int_to_ptr.vmem [resolvable:$true] %s250_s27 }
  0x74   : > { %s983_s24 = sshll.u32 %s246_s18, 6  ;;  %p2134_p7 = scmp.lt.s32.totalorder %s1516_s6, 4 }
  0x75   : > { %s1818_s17 = scalar_lea.hbm %s2072_s0, %s983_s24  ;;  %s238_s3 = scalar_lea.sflag [#allocation3], %s237_s14 }
  0x76   : > { %p1811_p10 = pnand %p2134_p7, %p1780_p9  ;;  %s1294_s7 = scalar_lea.hbm %s1818_s17, 64 }
  0x77   : > { %p1295_p6 = scmp.ne.s32.totalorder %s1818_s17, %s1294_s7  ;;  %s1299_s26 = scalar_lea.hbm %s2072_s0, 256 }
  0x78   : > { %p1296_p5 = pneg %p1811_p10  ;;  %p1300_p3 = scmp.lt.u32.totalorder %s1818_s17, %s2072_s0 }
  0x79   : > { %p1301_p9 = scmp.lt.u32.totalorder %s1299_s26, %s1294_s7  ;;  %p1303_p13 = scmp.lt.u32.totalorder %s1294_s7, %s1818_s17 }
  0x7a   : > { %p1297_p12 = pnand %p1296_p5, %p1295_p6 }
  0x7b   : > { %p1302_p11 = por %p1301_p9, %p1300_p3 }
  0x7c   : > { %p1298_p8 = pneg %p1297_p12 }
  0x7d   : > { %p1304_p2 = por %p1303_p13, %p1302_p11 }
  0x7f   : > { %p1305_p7 = pnand %p1304_p2, %p1298_p8 }
  0x81   : > { %1308 = shalt.err (!%p1305_p7)
}
  0x82   : > { %s1309_s14 = scalar_lea.vmem %s1805_s27, 64  ;;  %s1523_s12 = smov [#allocation2]  }
  0x83   : > { %p1310_p6 = scmp.ne.s32.totalorder %s1805_s27, %s1309_s14  ;;  %s1314_s21 = sshll.u32 %s1523_s12, 4  ;;  %s1315_s21 = int_to_ptr.vmem [resolvable:$false] %s1314_s21 }
  0x84   : > { %s1316_s18 = scalar_lea.vmem %s1315_s21, 128  ;;  %p1317_p0 = scmp.lt.s32.totalorder %s1805_s27, %s1315_s21 }
  0x85   : > { %p1312_p12 = pnand %p1310_p6, %p1296_p5  ;;  %p1318_p3 = scmp.lt.s32.totalorder %s1316_s18, %s1309_s14 }
  0x87   : > { %p1313_p1 = pneg %p1312_p12  ;;  %p1319_p9 = por %p1318_p3, %p1317_p0 }
  0x89   : > { %p1320_p11 = pnand %p1319_p9, %p1313_p1 }
  0x8b   : > { %1323 = shalt.err (!%p1320_p11)
}
  0x8c   : > { %1073 = dma.hbm_to_vmem [thread:$0]  (!%p1811_p10), %s1818_s17, 64, %s1805_s27, %s238_s3  }
  0x8d   : > { %s114_s7 = sadd.s32 1, %s1472_s20  ;;  %p121_p5 = scmp.ne.s32.totalorder %s1472_s20, %s1468_s19 }
  0x8e   : > { %p2136_p8 = scmp.eq.s32.totalorder %s1646_s9, 0  ;;  %p2137_p0 = scmp.eq.s32.totalorder %s1516_s6, 0 }
  0x8f   : > { %s284_s16 = sand.u32 1, %s1472_s20   ;;  %s1860_s14 = scalar_lea.hbm %s2074_s2, %s1713_s15 }
  0x90   : > { %s1851_s26 = scalar_select %p2136_p8, %s1472_s20, %s114_s7  }
  0x91   : > { %p123_p1 = por %p121_p5, %p2137_p0  ;;  %s988_s12 = sshll.u32 %s284_s16, 5 }
  0x92   : > { %p2138_p13 = scmp.lt.s32.totalorder %s1516_s6, 4  ;;  %s286_s9 = scalar_lea.vmem [#allocation7], %s988_s12 }
  0x93   : > { %s297_s27 = sshll.u32 %s286_s9, 4  ;;  %s1324_s3 = scalar_lea.hbm %s1860_s14, 512  ;;  %s1868_s27 = int_to_ptr.vmem [resolvable:$true] %s297_s27 }
  0x94   : > { %p1864_p10 = pnand %p2138_p13, %p123_p1  ;;  %p1325_p2 = scmp.ne.s32.totalorder %s1860_s14, %s1324_s3 }
  0x95   : > { %s1329_s18 = scalar_lea.hbm %s2074_s2, 2048  ;;  %p1330_p3 = scmp.lt.u32.totalorder %s1860_s14, %s2074_s2 }
  0x96   : > { %p1326_p7 = pneg %p1864_p10  ;;  %p1331_p9 = scmp.lt.u32.totalorder %s1329_s18, %s1324_s3 }
  0x97   : > { %p1333_p5 = scmp.lt.u32.totalorder %s1324_s3, %s1860_s14 }
  0x98   : > { %p1327_p6 = pnand %p1326_p7, %p1325_p2  ;;  %p1332_p11 = por %p1331_p9, %p1330_p3 }
  0x9a   : > { %p1328_p12 = pneg %p1327_p6  ;;  %p1334_p8 = por %p1333_p5, %p1332_p11 }
  0x9c   : > { %p1335_p0 = pnand %p1334_p8, %p1328_p12 }
  0x9e   : > { %1338 = shalt.err (!%p1335_p0)
}
  0x9f   : > { %s1339_s4 = scalar_lea.vmem %s1868_s27, 512  ;;  %s1524_s24 = smov [#allocation7]  }
  0xa0   : > { %p1340_p1 = scmp.ne.s32.totalorder %s1868_s27, %s1339_s4  ;;  %s1344_s12 = sshll.u32 %s1524_s24, 4  ;;  %s1345_s12 = int_to_ptr.vmem [resolvable:$false] %s1344_s12 }
  0xa1   : > { %s1346_s9 = scalar_lea.vmem %s1345_s12, 1024  ;;  %p1347_p6 = scmp.lt.s32.totalorder %s1868_s27, %s1345_s12 }
  0xa2   : > { %p1342_p13 = pnand %p1340_p1, %p1326_p7  ;;  %p1348_p3 = scmp.lt.s32.totalorder %s1346_s9, %s1339_s4 }
  0xa4   : > { %p1343_p2 = pneg %p1342_p13  ;;  %p1349_p9 = por %p1348_p3, %p1347_p6 }
  0xa6   : > { %p1350_p11 = pnand %p1349_p9, %p1343_p2 }
  0xa8   : > { %1353 = shalt.err (!%p1350_p11)
}
  0xa9   : > { %s2140_s3 = smov 256   ;;  %p2141_p7 = scmp.ne.s32.totalorder %s2121_s10, 0 }
  0xaa   : > { %1079 = dma.hbm_to_vmem [thread:$0]  (!%p1864_p10), %s1860_s14, 512, %s1868_s27, %s1680_s13, %s2140_s3, %s2125_s23, %s2124_s1  }
  0xab   : > { %309 = sbr.rel (%p2141_p7) target bundleno = 820 (0x334), region = 40  ;;  %s1902_s15 = sand.u32 (!%p2141_p7), 1, %s1492_s25  }
  0xac   : > { %s992_s21 = sshll.u32 (!%p2141_p7), %s1902_s15, 2  ;;  %s312_s18 = scalar_lea.sflag (!%p2141_p7), [#allocation3], %s1902_s15 }
  0xad   : > { %s315_s7 = scalar_lea.vmem (!%p2141_p7), [#allocation2], %s992_s21 }
  0xb2   : > { %1439 = dma.done.wait (%p1790_p4), %s312_s18, 64  }
  0xb3   : > { %1441 = vsyncadd (%p1790_p4), %s312_s18, 4294967232  ;;  %s320_s13 = sand.u32 1, %s1716_s5   ;;  %s322_s10 = sand.u32 1, %s1480_s22  }
  0xb4   : > { %s993_s1 = sshll.u32 %s322_s10, 5  ;;  %s321_s23 = scalar_lea.sflag [#allocation6], %s320_s13 }
  0xb5   : > { %s1912_s14 = scalar_lea.vmem [#allocation5], %s993_s1  ;;  %p2142_p10 = scmp.ne.s32.totalorder %s2118_s8, 0 }
  0xb7   : > { %1443 = dma.done.wait (%p2142_p10), %s321_s23, 512  }
  0xb8   : > { %1445 = vsyncadd (%p2142_p10), %s321_s23, 4294966784  ;;  %s2143_s17 = sld [smem:[#allocation24_spill]]  ;;  %s331_s27 = sand.u32 1, %s1468_s19  }
  0xb9   : > { %s994_s16 = sshll.u32 %s331_s27, 5 }
  0xba   : > { %s333_s11 = scalar_lea.vmem [#allocation7], %s994_s16 }
  0xbe   : > { %p2144_p4 = scmp.ne.s32.totalorder %s2143_s17, 0 }
  0xc0   : > { %1447 = dma.done.wait (%p2144_p4), %s321_s23, 512  }
  0xc1   : > { %1449 = vsyncadd (%p2144_p4), %s321_s23, 4294966784  ;;  %p2145_p12 = scmp.eq.s32.totalorder %s1716_s5, 0 }
  0xc3   : > { %1451 = dma.done.wait (%p2145_p12), [#allocation9], 384   ;;  %p2146_p5 = pmov %p2145_p12 }
  0xc4   : > { %s2147_s4 = sld [smem:[#allocation19_spill]]  ;;  %v380_v1 = vld [vmem:[%s315_s7] sm:$0xf]  ;;  %v386_v2 = vld [vmem:[%s333_s11 + $0x8] sm:$0xff]  ;;  %v387_v3 = vld [vmem:[%s333_s11 + $0x10] sm:$0xff]  ;;  %vm411_vm0 = vcmask 1041409   ;;  %v443_v50 = vlaneseq }
  0xc5   : > { %1453 = vsyncadd (%p2146_p5), [#allocation9], 4294966912  ;;  %v419_v5 = vrot.slane %v380_v1, 1  ;;  %v388_v6 = vld [vmem:[%s333_s11 + $0x18] sm:$0xff]  ;;  %v385_v9 = vld [vmem:[%s333_s11] sm:$0xff]  ;;  %vm414_vm1 = vcmask 1042434  }
  0xc6   : > { %v382_v12 = vld [vmem:[%s1912_s14 + $0x8] sm:$0xff]  ;;  %v383_v13 = vld [vmem:[%s1912_s14 + $0x10] sm:$0xff]  ;;  %v384_v14 = vld [vmem:[%s1912_s14 + $0x18] sm:$0xff]  ;;  %s1525_s5 = smov 16   ;;  %vm438_vm2 = vcmask 130048   ;;  %vm526_vm3 = vcmask 1044480  }
  0xc7   : > { %420 = vrot.lane.b32.xlu0 %v419_v5, %s1525_s5  ;;  %v381_v28 = vld [vmem:[%s1912_s14] sm:$0xff]  ;;  %s1526_s3 = smov 127   ;;  %v1527_v37 = vmov 0.0|0.0   ;;  %vm486_vm4 = vcmask 1040384   ;;  %s1528_s21 = smov 1   ;;  %v444_v51 = vand.u32 127, %v443_v50 }
  0xc8   : > { %1046 = vmatprep.subr.bf16.mxu1 %v1527_v37  ;;  %1042 = vmatprep.subr.bf16.mxu0 %v1527_v37  ;;  %vm512_vm7 = vcmask 1039360   ;;  %vm519_vm8 = vcmask 252928   ;;  %v1529_v57 = vmov 0.0   ;;  %vm497_vm10 = vcmask 7168   ;;  %s1532_s18 = smov 112   ;;  %s1534_s7 = smov 96  }
  0xc9   : > { %v445_v52 = vadd.s32 128, %v444_v51  ;;  %v450_v53 = vand.u32 15, %v444_v51  ;;  %vm536_vm12 = vcmask 1043456   ;;  %vm1530_vm13 = vmmov 0   ;;  %s2150_s1 = sld [smem:[#allocation29_spill]]  ;;  %s2151_s23 = sld [smem:[#allocation20_spill]] }
  0xca   : > { %p397_p8 = scmp.lt.s32.totalorder %s2147_s4, 1  ;;  %p389_p0 = scmp.gt.s32.totalorder %s2147_s4, 0  ;;  %1025 = vmatprep.mubr.msk.f32.mxu0 %vm1530_vm13, %v1529_v57  ;;  %1032 = vmatprep.mubr.msk.f32.mxu1 %vm1530_vm13, %v1529_v57  ;;  %vm1531_vm14 = vmmov 1  }
  0xcb   : > { %v457_v54 = vand.u32 15, %v445_v52  ;;  %vm476_vm5 = vcmp.le.s32.totalorder %v450_v53, 14  ;;  %vm470_vm9 = vcmp.ge.s32.totalorder %v450_v53, 1  ;;  %vm1967_vm15 = vmpackc.low %vm536_vm12, %vm1531_vm14  ;;  %s996_s14 = sshll.u32 %s1902_s15, 3  ;;  %s2152_s27 = sld [smem:[#allocation26_spill]] }
  0xcc   : > { %s398_s8 = scalar_select %p397_p8, 1, 0  ;;  %v999_v58 = vsel %vm476_vm5, 1.0, %v1529_v57 }
  0xcd   : > { %s390_s24 = scalar_select %p389_p0, 1, 0  ;;  %vm477_vm6 = vcmp.le.s32.totalorder %v457_v54, 14  ;;  %vm471_vm11 = vcmp.ge.s32.totalorder %v457_v54, 1 }
  0xce   : > { %s399_s12 = scvt.s32.f32 %s398_s8  ;;  %v1000_v60 = vsel %vm477_vm6, 1.0, %v1529_v57  ;;  %s373_s8 = scalar_lea.vmem [#allocation10], %s996_s14 }
  0xcf   : > { %s391_s9 = scvt.s32.f32 %s390_s24  ;;  %s1008_s17 = sshll.u32 %s2151_s23, 1 }
  0xd0   : > { %v400_v0 = vstv %s399_s12  ;;  %s828_s16 = sadd.s32 %s2147_s4, %s1008_s17  ;;  %s832_s24 = sshll.u32 %s373_s8, 4  ;;  %s1996_s24 = int_to_ptr.vmem [resolvable:$true] %s832_s24 }
  0xd1   : > { %v392_v4 = vstv %s391_s9  ;;  %v402_v7 = vmul.f32 %v400_v0, %v386_v2  ;;  %v403_v8 = vmul.f32 %v400_v0, %v387_v3  ;;  %v404_v10 = vmul.f32 %v400_v0, %v388_v6  ;;  %s1009_s11 = sshll.u32 %s828_s16, 7  ;;  %p2154_p13 = scmp.ne.s32.totalorder %s2152_s27, 0 }
  0xd2   : > { %v401_v11 = vmul.f32 %v400_v0, %v385_v9  ;;  %v394_v16 = vmul.f32 %v392_v4, %v382_v12  ;;  %v395_v17 = vmul.f32 %v392_v4, %v383_v13  ;;  %v396_v18 = vmul.f32 %v392_v4, %v384_v14  ;;  %s1535_s4 = smov [#allocation10]  }
  0xd3   : > { %v428_v15 = vrot.slane %v403_v8, 7  ;;  %v430_v19 = vrot.slane %v404_v10, 6  ;;  %v393_v29 = vmul.f32 %v392_v4, %v381_v28  ;;  %v997_v0 = vsel %vm470_vm9, 1.0, %v1529_v57  ;;  %v806_v28 = vld [vmem:[%s2150_s1] sm:$0xff] }
  0xd4   : > { %v427_v20 = vrot.slane %v401_v11, 1  ;;  %v409_v22 = vrot.slane %v394_v16, 7  ;;  %v410_v23 = vrot.slane %v395_v17, 6  ;;  %v413_v24 = vrot.slane %v396_v18, 5 }
  0xd5   : > { %v429_v21 = vsel %vm411_vm0, %v428_v15, %v402_v7  ;;  %v998_v11 = vsel %vm471_vm11, 1.0, %v1529_v57 }
  0xd6   : > { %v431_v25 = vsel %vm414_vm1, %v430_v19, %v429_v21  ;;  %432 = vrot.lane.b32.xlu0 %v427_v20, %s1525_s5  ;;  %v412_v26 = vsel %vm411_vm0, %v410_v23, %v409_v22  ;;  %vm565_vm0 = vcmask 97280  }
  0xd7   : > { %434 = vrot.lane.b32.xlu1 %v431_v25, %s1525_s5  ;;  %v415_v27 = vsel %vm414_vm1, %v413_v24, %v412_v26  ;;  %v538_v26 = vld [vmem:[#allocation8] sm:$0xff]  ;;  %vm561_vm1 = vcmask 916480   ;;  %s2153_s5 = sld [smem:[#allocation30_spill]] }
 0x139   : > { %v421_v30 = vpop.permute.xlu0 %420 }
 0x13a   : > { %v439_v31 = vsel %vm438_vm2, %v393_v29, %v421_v30  ;;  %v440_v32 = vsel %vm438_vm2, %v415_v27, %v421_v30  ;;  %v1533_v27 = vmov 0  }
 0x13b   : > { %504 = vrot.lane.b32.xlu1 %v439_v31, %s1526_s3  ;;  %v527_v33 = vrot.slane %v439_v31, 3  ;;  %v528_v34 = vrot.slane %v440_v32, 3  ;;  %v487_v39 = vrot.slane %v439_v31, 7  ;;  %v488_v40 = vrot.slane %v440_v32, 7  ;;  %1235 = vset.pattern.permute.xlu0 %v1533_v27 }
 0x13c   : > { %1234 = vset.pattern.permute.xlu1 %v1533_v27 }
 0x13d   : > { %v1941_v38 = vsel %vm526_vm3, %v527_v33, %v528_v34  ;;  %v489_v47 = vsel %vm486_vm4, %v487_v39, %v488_v40 }
 0x13f   : > { %508 = vrot.lane.b32.xlu1 %v440_v32, %s1526_s3 }
 0x143   : > { %493 = vrot.lane.b32.xlu1 %v489_v47, %s1528_s21 }
 0x148   : > { %v433_v36 = vpop.permute.xlu0 %432 }
 0x149   : > { %v435_v35 = vpop.permute.xlu1 %434  ;;  %v441_v41 = vsel %vm438_vm2, %v421_v30, %v433_v36 }
 0x14a   : > { %v442_v42 = vsel %vm438_vm2, %v421_v30, %v435_v35  ;;  %506 = vrot.lane.b32.xlu0 %v441_v41, %s1526_s3  ;;  %v539_v43 = vrot.slane %v441_v41, 3  ;;  %v490_v46 = vrot.slane %v441_v41, 7  ;;  %vm726_vm2 = vcmask 785408  }
 0x14b   : > { %v540_v44 = vrot.slane %v442_v42, 3  ;;  %v491_v48 = vrot.slane %v442_v42, 7 }
 0x14d   : > { %v541_v45 = vsel %vm526_vm3, %v539_v43, %v540_v44  ;;  %v492_v49 = vsel %vm486_vm4, %v490_v46, %v491_v48 }
 0x14e   : > { %510 = vrot.lane.b32.xlu0 %v442_v42, %s1526_s3  ;;  %s1994_s3 = scalar_lea.hbm %s2153_s5, %s1009_s11 }
 0x152   : > { %495 = vrot.lane.b32.xlu0 %v492_v49, %s1528_s21  ;;  %v717_v49 = vld [vmem:[#allocation8 + $0x10] sm:$0xff]  ;;  %s817_s21 = scalar_lea.sflag [#allocation4], %s1902_s15 }
 0x1ad   : > { %v505_v55 = vpop.permute.xlu1 %504 }
 0x1b1   : > { %v509_v56 = vpop.permute.xlu1 %508 }
 0x1b5   : > { %v494_v2 = vpop.permute.xlu1 %493 }
 0x1b6   : > { %v501_v4 = vsel %vm497_vm10, 0.0, %v494_v2 }
 0x1b7   : > { %v502_v7 = vmul.f32 %v997_v0, %v501_v4 }
 0x1b9   : > { %v537_v19 = vsel %vm536_vm12, %v502_v7, %v1941_v38 }
 0x1bc   : > { %v507_v59 = vpop.permute.xlu0 %506 }
 0x1bd   : > { %v513_v61 = vsel %vm512_vm7, %v505_v55, %v507_v59  ;;  %v520_v62 = vsel %vm519_vm8, %v507_v59, 0.0 }
 0x1be   : > { %v522_v63 = vmul.f32 %v999_v58, %v513_v61  ;;  %v523_v1 = vmul.f32 %v1000_v60, %v520_v62 }
 0x1c0   : > { %v511_v3 = vpop.permute.xlu0 %510  ;;  %v533_v10 = vrot.slane %v522_v63, 7  ;;  %v545_v12 = vrot.slane %v523_v1, 7 }
 0x1c1   : > { %v514_v5 = vsel %vm512_vm7, %v509_v56, %v511_v3  ;;  %v521_v6 = vsel %vm519_vm8, %v511_v3, 0.0 }
 0x1c2   : > { %v524_v8 = vmul.f32 %v999_v58, %v514_v5  ;;  %v525_v9 = vmul.f32 %v1000_v60, %v521_v6 }
 0x1c4   : > { %v534_v13 = vrot.slane %v524_v8, 7  ;;  %v546_v14 = vrot.slane %v525_v9, 7  ;;  %v496_v15 = vpop.permute.xlu0 %495 }
 0x1c5   : > { %v498_v16 = vsel %vm497_vm10, %v494_v2, %v496_v15 }
 0x1c6   : > { %v503_v17 = vmul.f32 %v998_v11, %v498_v16  ;;  %v535_v18 = vsel %vm486_vm4, %v533_v10, %v534_v13  ;;  %v547_v21 = vsel %vm486_vm4, %v545_v12, %v546_v14 }
 0x1c7   : > { %v1047_v22 = vpack.c.bf16 %v535_v18, %v537_v19  ;;  %v1214_v23 = vpack.i.bf16 %v547_v21, %v535_v18 }
 0x1c8   : > { %v548_v24 = vsel %vm536_vm12, %v503_v17, %v541_v45  ;;  %v550_v45 = vld [vmem:[#allocation8 + $0x8] sm:$0xff] }
 0x1c9   : > { %1049 = vmatpush3.bf16.msk.msra.mxu1 %vm1967_vm15, %v1047_v22  ;;  %1215 = vrot.lane.b32.xlu0 %v1214_v23, %s1532_s18  ;;  %v1219_v25 = vpack.i.bf16 %v548_v24, %v537_v19 }
 0x1cb   : > { %1220 = vrot.lane.b32.xlu1 %v1219_v25, %s1532_s18  ;;  %s1354_s18 = scalar_lea.vmem %s1996_s24, 128 }
 0x1cc   : > { %1033 = vmatmul.mubr.msk.f32.vlgmr.msra.gmra.mrb[0].mxu1 %vm565_vm0, %v538_v26  ;;  %p1355_p1 = scmp.ne.s32.totalorder %s1996_s24, %s1354_s18 }
 0x1cd   : > { %1230 = vrot.lane.b32.xlu0 %v1214_v23, %s1534_s7 }
 0x1ce   : > { %p1356_p2 = pnand %p1355_p1, %p2154_p13 }
 0x1cf   : > { %1225 = vrot.lane.b32.xlu1 %v1219_v25, %s1534_s7  ;;  %s1358_s7 = sshll.u32 %s1535_s4, 4  ;;  %s1359_s7 = int_to_ptr.vmem [resolvable:$false] %s1358_s7 }
 0x1d0   : > { %p1357_p6 = pneg %p1356_p2  ;;  %s1360_s13 = scalar_lea.vmem %s1359_s7, 256 }
 0x1d1   : > { %p1361_p3 = scmp.lt.s32.totalorder %s1996_s24, %s1359_s7  ;;  %p1362_p9 = scmp.lt.s32.totalorder %s1360_s13, %s1354_s18 }
 0x1d3   : > { %809 = vperm.xlu1 %1234, %v806_v28   ;;  %p1363_p11 = por %p1362_p9, %p1361_p3 }
 0x1d5   : > { %p1364_p7 = pnand %p1363_p11, %p1357_p6 }
 0x23b   : > { %v1216_v29 = vpop.permute.xlu0 %1215 }
 0x23c   : > { %v1218_v30 = vunpack.i.h.bf16 %v1216_v29  ;;  %v1217_v31 = vunpack.i.l.bf16 %v1216_v29 }
 0x23d   : > { %v1221_v32 = vpop.permute.xlu1 %1220 }
 0x23e   : > { %v1223_v33 = vunpack.i.h.bf16 %v1221_v32  ;;  %v1222_v34 = vunpack.i.l.bf16 %v1221_v32  ;;  %v563_v40 = vsel %vm561_vm1, %v1217_v31, %v1218_v30 }
 0x23f   : > { %v1231_v35 = vpop.permute.xlu0 %1230 }
 0x240   : > { %v1233_v36 = vunpack.i.h.bf16 %v1231_v35  ;;  %v1232_v38 = vunpack.i.l.bf16 %v1231_v35  ;;  %v562_v39 = vsel %vm561_vm1, %v1222_v34, %v1223_v33 }
 0x241   : > { %v1226_v41 = vpop.permute.xlu1 %1225  ;;  %v1043_v42 = vpack.c.bf16 %v563_v40, %v562_v39 }
 0x242   : > { %v1228_v43 = vunpack.i.h.bf16 %v1226_v41  ;;  %v1227_v44 = vunpack.i.l.bf16 %v1226_v41  ;;  %v728_v46 = vsel %vm726_vm2, %v1232_v38, %v1233_v36 }
 0x243   : > { %1045 = vmatpush3.bf16.msk.msra.mxu0 %vm1967_vm15, %v1043_v42 }
 0x244   : > { %v727_v47 = vsel %vm726_vm2, %v1227_v44, %v1228_v43  ;;  %1050 = vmatprep.subr.bf16.mxu0 %v1527_v37 }
 0x245   : > { %v1051_v48 = vpack.c.bf16 %v728_v46, %v727_v47 }
 0x246   : > { %1026 = vmatmul.mubr.msk.f32.vlgmr.msra.gmra.mrb[0].mxu0 %vm565_vm0, %v550_v45 }
 0x247   : > { %1053 = vmatpush3.bf16.msk.msra.mxu0 %vm1967_vm15, %v1051_v48  ;;  %1039 = vmatprep.mubr.msk.f32.mxu0 %vm1530_vm13, %v1529_v57 }
 0x24a   : > { %1040 = vmatmul.mubr.msk.f32.vlgmr.msra.gmra.mrb[2].mxu0 %vm565_vm0, %v717_v49 }
 0x252   : > { %v810_v55 = vpop.permute.xlu1 %809 }
 0x29f   : > { %v712_v50 = vpop.f32.mrb[0].mxu1 }
 0x2a0   : > { %v1034_v51 = vpop.f32.mrb[1].mxu1 }
 0x319   : > { %v637_v52 = vpop.f32.mrb[0].mxu0 }
 0x31a   : > { %v1027_v53 = vpop.f32.mrb[1].mxu0  ;;  %v713_v54 = vadd.f32 %v712_v50, %v637_v52 }
 0x31d   : > { %v801_v37 = vpop.f32.mrb[2].mxu0 }
 0x31e   : > { %v805_v56 = vadd.f32 %v801_v37, %v713_v54  ;;  %v1041_v58 = vpop.f32.mrb[3].mxu0 }
 0x320   : > { %v812_v59 = vadd.f32 %v810_v55, %v805_v56 }
 0x322   : > { %v813_v57 = vmul.f32 0.2, %v812_v59 }
 0x324   : > { %v814_v60 = vmax.f32 %v812_v59, %v813_v57 }
 0x326   : > { %815 = vst [vmem:[%s373_s8] sm:$0xff] %v814_v60 }
 0x327   : > { %1367 = shalt.err (!%p1364_p7)
}
 0x328   : > { %s1368_s15 = scalar_lea.hbm %s1994_s3, 128  ;;  %s1372_s23 = scalar_lea.hbm %s2153_s5, 512 }
 0x329   : > { %p1369_p10 = scmp.ne.s32.totalorder %s1994_s3, %s1368_s15  ;;  %p1373_p5 = scmp.lt.u32.totalorder %s1994_s3, %s2153_s5 }
 0x32a   : > { %p1374_p8 = scmp.lt.u32.totalorder %s1372_s23, %s1368_s15  ;;  %p1376_p1 = scmp.lt.u32.totalorder %s1368_s15, %s1994_s3 }
 0x32b   : > { %p1370_p4 = pnand %p1369_p10, %p2154_p13 }
 0x32c   : > { %p1375_p0 = por %p1374_p8, %p1373_p5 }
 0x32d   : > { %p1371_p12 = pneg %p1370_p4 }
 0x32e   : > { %p1377_p2 = por %p1376_p1, %p1375_p0 }
 0x330   : > { %p1378_p6 = pnand %p1377_p2, %p1371_p12 }
 0x332   : > { %1381 = shalt.err (!%p1378_p6)
}
 0x333   : > { %1064 = dma.vmem_to_hbm [thread:$0]  (%p2154_p13), %s1996_s24, 128, %s1994_s3, %s817_s21  }
 0x334 PF: > { %s2155_s16 = sld [smem:[#allocation17_spill]]  ;;  %p1087_p3 = scmp.ge.s32.totalorder %s1516_s6, 2 }
 0x335   : > { %p2156_p9 = scmp.ne.s32.totalorder %s2133_s28, 0 }
 0x337   : > { %p1081_p11 = pnand %p1087_p3, %p2156_p9 }
 0x33a   : > { %s844_s11 = sand.u32 1, %s2155_s16  }
 0x33b   : > { %s845_s8 = scalar_lea.sflag [#allocation4], %s844_s11 }
 0x33c   : > { %1455 = dma.done.wait (!%p1081_p11), %s845_s8, 128  }
 0x33d   : > { %1457 = vsyncadd (!%p1081_p11), %s845_s8, 4294967168  ;;  %s25_s6 = sadd.s32 1, %s1516_s6   ;;  %s2158_s27 = sld [smem:[#allocation16_spill]] }
 0x33e   : > { %p2025_p7 = scmp.ge.s32.totalorder %s25_s6, 6   ;;  %s2159_s23 = sld [smem:[#allocation23_spill]] }
 0x33f   : > { %s2160_s9 = sld [smem:[#allocation18_spill]]  ;;  %s2161_s3 = sld [smem:[#allocation25_spill]] }
 0x340   : > { %s2162_s4 = sld [smem:[#allocation21_spill]]  ;;  %s2163_s7 = sld [smem:[#allocation22_spill]] }
 0x341   : > { %s2164_s18 = smov %s1468_s19  ;;  %s2165_s19 = smov %s1472_s20 }
 0x342   : > { %s2166_s20 = smov %s1851_s26  ;;  %s2167_s21 = smov %s1480_s22 }
 0x343   : > { %s2168_s22 = smov %s2158_s27  ;;  %s2169_s24 = smov %s1492_s25 }
 0x344   : > { %s2172_s27 = smov %s1508_s29  ;;  %s2173_s28 = smov %s1512_s30 }
 0x345   : > { %s2170_s25 = smov %s2160_s9  ;;  %s2171_s26 = smov %s2161_s3 }
 0x346   : > { %s2174_s29 = smov %s2162_s4  ;;  %s2175_s30 = smov %s2163_s7 }
 0x347   :  { %24 = sbr.rel (!%p2025_p7) target bundleno = 18 (0x12), region = 115 }
 0x34e   :  { %850 = vsyncpa [#allocation3], 1 }
 0x34f   :  { %852 = vsyncpa [#allocation3 + $0x1], 1 }
 0x350   :  { %853 = vsyncpa [#allocation6], 1 }
 0x351   :  { %855 = vsyncpa [#allocation6 + $0x1], 1 }
 0x352   :  { %856 = vsyncpa [#allocation9], 1 }
 0x353   :  { %857 = vsyncpa [#allocation4], 1 }
 0x354   :  { %859 = vsyncpa [#allocation4 + $0x1], 1 }

</bundles_post_ra>
